<compile_context>
chip_gen: v6e
topology: v6e:2x2x1
jax: 0.10.0
libtpu: 0.0.40
codegen_flags: <defaults>
</compile_context>

<pallas_src>
import jax
import jax.numpy as jnp
from jax.experimental import pallas as pl
from jax.experimental.pallas import tpu as pltpu


def _round_up(n, m):
    return ((n + m - 1) // m) * m


def _make_dense_kernel(activation):
    def dense_kernel(x_ref, wc_ref, bc_ref, o_ref):
        # Single fused matmul: out = x @ Wc + bc  (f32 accumulation on the MXU)
        acc = jnp.dot(x_ref[...], wc_ref[...], preferred_element_type=jnp.float32)
        acc = acc + bc_ref[...]
        if activation is not None:
            acc = activation(acc)           # applied after the affine map, exact w.r.t. the fold
        o_ref[...] = acc.astype(o_ref.dtype)

    return dense_kernel


def dense_prepare_params(wv, bv, w1, w2, b, *, lane=128):
    """One-time fold of the module parameters.

    wv: (D, D) PyTorch nn.Linear weight (out, in); bv: (D,)
    w1: (D, H); w2: (D, H); b: (H,)
    Returns (wc_padded (D, Hp), bc_padded (1, Hp), H) with Hp a multiple of
    `lane` so the kernel's output tile is lane-dense (unmasked stores).
    """
    D, H = w1.shape
    hi = jax.lax.Precision.HIGHEST          # one-time cost; keep the fold exact in f32
    wc = w1 + jnp.matmul(wv.T, w2, precision=hi)          # (D, H)
    bc = jnp.matmul(bv.reshape(1, D), w2, precision=hi) + b.reshape(1, H)  # (1, H)
    Hp = _round_up(H, lane)
    wc_p = jnp.zeros((D, Hp), dtype=wc.dtype).at[:, :H].set(wc)
    bc_p = jnp.zeros((1, Hp), dtype=bc.dtype).at[:, :H].set(bc)
    return wc_p, bc_p, H


def dense_forward(x, wc_p, bc_p, H, *, tm=128, activation=None):
    """x: (..., D) — all leading dims (e.g. time, batch) are folded into the MXU
    row dimension. Returns (..., H)."""
    *lead, D = x.shape
    x2 = x.reshape(-1, D)
    M = x2.shape[0]
    Hp = wc_p.shape[1]

    # Row tile: multiple of 8 sublanes; don't tile beyond the problem size.
    tm_eff = min(tm, _round_up(M, 8))
    M_pad = _round_up(M, tm_eff)
    if M_pad != M:
        x2 = jnp.zeros((M_pad, D), dtype=x2.dtype).at[:M, :].set(x2)

    grid = (M_pad // tm_eff,)
    out_p = pl.pallas_call(
        _make_dense_kernel(activation),
        out_shape=jax.ShapeDtypeStruct((M_pad, Hp), x.dtype),
        grid_spec=pltpu.PrefetchScalarGridSpec(
            num_scalar_prefetch=0,
            grid=grid,
            in_specs=[
                pl.BlockSpec((tm_eff, D), lambda i: (i, 0)),   # activations: tiled over rows
                pl.BlockSpec((D, Hp), lambda i: (0, 0)),       # folded weight: resident
                pl.BlockSpec((1, Hp), lambda i: (0, 0)),       # folded bias: resident
            ],
            out_specs=pl.BlockSpec((tm_eff, Hp), lambda i: (i, 0)),
        ),
        compiler_params=pltpu.CompilerParams(
            dimension_semantics=("parallel",),   # shards rows across v7x's 2 TCs; no-op on v5e/v6e
        ),
    )(x2, wc_p, bc_p)

    return out_p[:M, :H].reshape(*lead, H)


if __name__ == "__main__":
    # Shapes consistent with how ACRNN uses this block (self-attention over
    # time): the wrapper folds (T, B, D) -> (T*B, D) so M = 256 >= 128.
    T, B, D, H = 32, 8, 32, 32
    key = jax.random.PRNGKey(0)
    kx, kwv, kbv, kw1, kw2 = jax.random.split(key, 5)

    x = jax.random.normal(kx, (T, B, D), dtype=jnp.float32)

    # Parameter shapes match the PyTorch module __init__ (input_dim1 == input_dim2 == D).
    wv = jax.random.normal(kwv, (D, D), dtype=jnp.float32) * 0.1   # nn.Linear weight (out, in)
    bv = jax.random.normal(kbv, (D,), dtype=jnp.float32) * 0.1     # nn.Linear bias
    w1 = jax.random.normal(kw1, (D, H), dtype=jnp.float32)         # np.random.normal
    w2 = jax.random.normal(kw2, (D, H), dtype=jnp.float32)         # np.random.normal
    b = jnp.zeros((H,), dtype=jnp.float32)                         # zeros

    # One-time parameter fold (would live at model-load / param-init time).
    wc_p, bc_p, H_out = dense_prepare_params(wv, bv, w1, w2, b)

    out = dense_forward(x, wc_p, bc_p, H_out, tm=128)
    out = jax.block_until_ready(out)

    # Pure-JAX reference of the *unfolded* PyTorch forward (identity activation).
    x2 = x.reshape(-1, D)
    y_ref = x2 @ wv.T + bv
    ref = (x2 @ w1 + y_ref @ w2 + b).reshape(T, B, H)

    assert out.shape == (T, B, H)
    # Fold is mathematically exact; slightly looser atol only covers the changed
    # FP summation order (real bugs would be O(1) errors).
    assert jnp.allclose(out, ref, atol=1e-3, rtol=1e-4), "mismatch vs reference"

    print("KERNEL_OK")
</pallas_src>

<mosaic_0001>
module attributes {stable_mosaic.version = 11 : i64} {
  func.func @dense_kernel(%arg0: i32, %arg1: memref<128x32xf32, #tpu.memory_space<vmem>>, %arg2: memref<32x128xf32, #tpu.memory_space<vmem>>, %arg3: memref<1x128xf32, #tpu.memory_space<vmem>>, %arg4: memref<128x128xf32, #tpu.memory_space<vmem>>) attributes {dimension_semantics = [#tpu.dimension_semantics<parallel>], iteration_bounds = array<i64: 2>, scalar_prefetch = 0 : i64, scratch_operands = 0 : i64, tpu.core_type = #tpu.core_type<tc>, window_params = [{transform_indices = @transform_0, window_bounds = array<i64: 128, 32>}, {pipeline_mode = #tpu.pipeline_mode<synchronous>, transform_indices = @transform_1, window_bounds = array<i64: 32, 128>}, {pipeline_mode = #tpu.pipeline_mode<synchronous>, transform_indices = @transform_2, window_bounds = array<i64: 1, 128>}, {transform_indices = @transform_3, window_bounds = array<i64: 128, 128>}]} {
    %c0 = arith.constant 0 : index
    %c0_0 = arith.constant 0 : index
    %0 = vector.load %arg1[%c0, %c0_0] : memref<128x32xf32, #tpu.memory_space<vmem>>, vector<128x32xf32>
    %c0_1 = arith.constant 0 : index
    %c0_2 = arith.constant 0 : index
    %1 = vector.load %arg2[%c0_1, %c0_2] : memref<32x128xf32, #tpu.memory_space<vmem>>, vector<32x128xf32>
    %cst = arith.constant dense<0.000000e+00> : vector<128x128xf32>
    %2 = tpu.matmul %0, %1, %cst {dimension_numbers = #tpu.dot_dimension_numbers<[1], [0], [0], [1], [0, 0, 1, 1], [], []>} : vector<128x32xf32>, vector<32x128xf32>, vector<128x128xf32> -> vector<128x128xf32>
    %c0_3 = arith.constant 0 : index
    %c0_4 = arith.constant 0 : index
    %3 = vector.load %arg3[%c0_3, %c0_4] : memref<1x128xf32, #tpu.memory_space<vmem>>, vector<1x128xf32>
    %4 = vector.broadcast %3 : vector<1x128xf32> to vector<128x128xf32>
    %5 = arith.addf %2, %4 : vector<128x128xf32>
    %c0_5 = arith.constant 0 : index
    %c0_6 = arith.constant 0 : index
    %6 = vector.load %arg4[%c0_5, %c0_6] : memref<128x128xf32, #tpu.memory_space<vmem>>, vector<128x128xf32>
    tpu.vector_store %arg4[%c0_5, %c0_6], %5 {strides = array<i32>} : memref<128x128xf32, #tpu.memory_space<vmem>>, vector<128x128xf32>,
    return
  }
  func.func @transform_0(%arg0: i32) -> (i32, i32) {
    %c0_i32 = arith.constant 0 : i32
    %c0_i32_0 = arith.constant 0 : i32
    return %arg0, %c0_i32 : i32, i32
  }
  func.func @transform_1(%arg0: i32) -> (i32, i32) {
    %c0_i32 = arith.constant 0 : i32
    %c0_i32_0 = arith.constant 0 : i32
    %c0_i32_1 = arith.constant 0 : i32
    return %c0_i32, %c0_i32_0 : i32, i32
  }
  func.func @transform_2(%arg0: i32) -> (i32, i32) {
    %c0_i32 = arith.constant 0 : i32
    %c0_i32_0 = arith.constant 0 : i32
    %c0_i32_1 = arith.constant 0 : i32
    return %c0_i32, %c0_i32_0 : i32, i32
  }
  func.func @transform_3(%arg0: i32) -> (i32, i32) {
    %c0_i32 = arith.constant 0 : i32
    %c0_i32_0 = arith.constant 0 : i32
    return %arg0, %c0_i32 : i32, i32
  }
}

</mosaic_0001>

<bundles_post_ra>
// kernel: tpu_custom_call.1
= control target key start
LH: loop header
LB: loop body
LE: loop exit
PB: predicated region body
PF: predicated region fallthrough
CT: control target
= control target key end

     0   :  { %8 = vsyncpa [#allocation3], 0  ;;  %s874_s0 = inlined_call_operand.vmem [shape: f32[256,32], index: 0, kind: input, shape index: {}]   ;;  %s875_s1 = inlined_call_operand.vmem [shape: f32[32,128], index: 1, kind: input, shape index: {}]   ;;  %s876_s2 = inlined_call_operand.vmem [shape: f32[1,128], index: 2, kind: input, shape index: {}]   ;;  %s877_s3 = inlined_call_operand.hbm [shape: f32[256,128], index: 3, kind: output, shape index: {}]  }
   0x1   :  { %10 = vsyncpa [#allocation3 + $0x1], 0  ;;  %s701_s12 = smov 0   ;;  %s703_s13 = smov 0  }
   0x2   :  { %s705_s14 = smov 0   ;;  %s707_s15 = smov 0  }
   0x3 LB: > { %s722_s16 = sadd.s32 4294967295, %s676_s15   ;;  %s485_s17 = sadd.s32 4294967294, %s676_s15   ;;  %s676_s15 = sphi %s707_s15, %s883_s15   ;;  %s672_s14 = sphi %s705_s14, %s882_s14   ;;  %s668_s13 = sphi %s703_s13, %s881_s13   ;;  %s664_s12 = sphi %s701_s12, %s880_s12  }
   0x4   : > { %s726_s18 = sadd.s32 1, %s676_s15   ;;  %s91_s19 = sadd.s32 1, %s672_s14 }
   0x5   : > { %s88_s20 = ssub.s32 %s676_s15, %s726_s18  ;;  %p101_p0 = scmp.ne.s32.totalorder %s672_s14, %s668_s13 }
   0x6   : > { %p89_p1 = scmp.eq.s32.totalorder %s88_s20, 0  ;;  %p102_p2 = scmp.eq.s32.totalorder %s722_s16, 1 }
   0x7   : > { %p107_p3 = scmp.ne.s32.totalorder %s668_s13, %s664_s12  ;;  %p108_p4 = scmp.eq.s32.totalorder %s485_s17, 1 }
   0x8   : > { %s737_s21 = scalar_select %p89_p1, %s672_s14, %s91_s19  }
   0x9   : > { %p739_p5 = por %p102_p2, %p101_p0  ;;  %p743_p6 = por %p108_p4, %p107_p3 }
   0xa   : > { %p488_p7 = scmp.ge.s32.totalorder %s676_s15, 1  ;;  %p141_p8 = scmp.lt.s32.totalorder %s676_s15, 3 }
   0xc   : > { %p142_p9 = pnand %p488_p7, %p141_p8 }
   0xd   : > { %s490_s28 = sshll.u32 (!%p142_p9), %s722_s16, 4  ;;  %s162_s10 = sand.u32 (!%p142_p9), 1, %s668_s13  }
   0xe   : > { %145 = sbr.rel (%p142_p9) target bundleno = 252 (0xfc), region = 32  ;;  %p166_p10 = scmp.lt.s32.totalorder (!%p142_p9), %s490_s28, 31 }
   0xf   : > { %s489_s11 = sshll.u32 (!%p142_p9), %s162_s10, 7  ;;  %s514_s24 = sshll.u32 (!%p142_p9), %s722_s16, 11 }
  0x10   : > { %s805_s20 = scalar_lea.vmem (!%p142_p9), [#allocation2], %s489_s11  ;;  %s834_s16 = scalar_lea.sflag (!%p142_p9), [#allocation3], %s162_s10 }
  0x11   : > { %s423_s25 = sshll.u32 (!%p142_p9), %s805_s20, 4  ;;  %s678_s30 = smov (!%p142_p9), [#allocation2]   ;;  %s826_s25 = int_to_ptr.vmem [resolvable:$true] %s423_s25 }
  0x12   : > { %s616_s29 = scalar_lea.vmem (!%p142_p9), %s826_s25, 2048  ;;  %s620_s4 = sshll.u32 (!%p142_p9), %s678_s30, 4  ;;  %s621_s4 = int_to_ptr.vmem [resolvable:$false] %s620_s4 }
  0x13   : > { %v191_v0 = vld [vmem:[%s875_s1 + $0x18] sm:$0xff]  ;;  %v190_v1 = vld [vmem:[%s875_s1 + $0x10] sm:$0xff]  ;;  %v189_v2 = vld [vmem:[%s875_s1 + $0x8] sm:$0xff]  ;;  %s885_s28 = smov (!%p166_p10, %s490_s28), 31  ;;  %vm199_vm0 = vcmask 261120   ;;  %p617_p11 = scmp.ne.s32.totalorder %s826_s25, %s616_s29 }
  0x14   : > { %535 = vmatprep.subr.mxu0 %v191_v0  ;;  %567 = vmatprep.subr.mxu1 %v191_v0  ;;  %v188_v3 = vld [vmem:[%s875_s1] sm:$0xff]  ;;  %s491_s6 = sshll.u32 %s885_s28, 3  ;;  %s824_s28 = scalar_lea.hbm %s877_s3, %s514_s24 }
  0x15   : > { %536 = vmatpush3.msra.mxu0 %v191_v0  ;;  %571 = vmatpush3.msra.mxu1 %v191_v0  ;;  %s765_s9 = scalar_lea.vmem %s874_s0, %s491_s6  ;;  %v492_v20 = vld [vmem:[%s876_s2] ss:$0 sm:$0xff]  ;;  %p618_p12 = pnand %p617_p11, %p739_p5 }
  0x16   : > { %537 = vmatprep.subr.mxu0 %v190_v1  ;;  %568 = vmatprep.subr.mxu1 %v190_v1  ;;  %v172_v4 = vld [vmem:[%s765_s9] sm:$0xff]  ;;  %v173_v6 = vld [vmem:[%s765_s9 + $0x8] sm:$0xff]  ;;  %v174_v8 = vld [vmem:[%s765_s9 + $0x10] sm:$0xff]  ;;  %s622_s5 = scalar_lea.vmem %s621_s4, 4096  ;;  %p623_p0 = scmp.lt.s32.totalorder %s826_s25, %s621_s4 }
  0x17   : > { %538 = vmatpush3.msra.mxu0 %v190_v1  ;;  %572 = vmatpush3.msra.mxu1 %v190_v1  ;;  %v180_v5 = vld [vmem:[%s765_s9 + $0x40] sm:$0xff]  ;;  %v181_v7 = vld [vmem:[%s765_s9 + $0x48] sm:$0xff]  ;;  %v182_v9 = vld [vmem:[%s765_s9 + $0x50] sm:$0xff]  ;;  %p619_p13 = pneg %p618_p12  ;;  %p624_p1 = scmp.lt.s32.totalorder %s622_s5, %s616_s29 }
  0x18   : > { %539 = vmatprep.subr.mxu0 %v189_v2  ;;  %569 = vmatprep.subr.mxu1 %v189_v2  ;;  %v175_v10 = vld [vmem:[%s765_s9 + $0x18] sm:$0xff]  ;;  %v176_v12 = vld [vmem:[%s765_s9 + $0x20] sm:$0xff]  ;;  %v177_v14 = vld [vmem:[%s765_s9 + $0x28] sm:$0xff] }
  0x19   : > { %540 = vmatpush3.msra.mxu0 %v189_v2  ;;  %573 = vmatpush3.msra.mxu1 %v189_v2  ;;  %v183_v11 = vld [vmem:[%s765_s9 + $0x58] sm:$0xff]  ;;  %v184_v13 = vld [vmem:[%s765_s9 + $0x60] sm:$0xff]  ;;  %v185_v15 = vld [vmem:[%s765_s9 + $0x68] sm:$0xff]  ;;  %p625_p2 = por %p624_p1, %p623_p0 }
  0x1a   : > { %541 = vmatprep.subr.mxu0 %v188_v3  ;;  %570 = vmatprep.subr.mxu1 %v188_v3  ;;  %v178_v16 = vld [vmem:[%s765_s9 + $0x30] sm:$0xff]  ;;  %v179_v18 = vld [vmem:[%s765_s9 + $0x38] sm:$0xff] }
  0x1b   : > { %542 = vmatpush3.msra.mxu0 %v188_v3  ;;  %574 = vmatpush3.msra.mxu1 %v188_v3  ;;  %v186_v17 = vld [vmem:[%s765_s9 + $0x70] sm:$0xff]  ;;  %v187_v19 = vld [vmem:[%s765_s9 + $0x78] sm:$0xff]  ;;  %p626_p3 = pnand %p625_p2, %p619_p13 }
  0x1c   : > { %543 = vmatprep.mubr.msk.f32.mxu0 %vm199_vm0, %v172_v4  ;;  %555 = vmatprep.mubr.msk.f32.mxu1 %vm199_vm0, %v180_v5 }
  0x1d   : > { %544 = vmatmul.mubr.msk.f32.vlgmr.msra.gmra.mxu0 %vm199_vm0, %v173_v6  ;;  %556 = vmatmul.mubr.msk.f32.vlgmr.msra.gmra.mxu1 %vm199_vm0, %v181_v7 }
  0x1e   : > { %546 = vmatprep.mubr.msk.f32.mxu0 %vm199_vm0, %v174_v8  ;;  %558 = vmatprep.mubr.msk.f32.mxu1 %vm199_vm0, %v182_v9 }
  0x21   : > { %547 = vmatmul.mubr.msk.f32.gmra.mxu0 %vm199_vm0, %v175_v10  ;;  %559 = vmatmul.mubr.msk.f32.gmra.mxu1 %vm199_vm0, %v183_v11 }
  0x22   : > { %549 = vmatprep.mubr.msk.f32.mxu0 %vm199_vm0, %v176_v12  ;;  %561 = vmatprep.mubr.msk.f32.mxu1 %vm199_vm0, %v184_v13 }
  0x25   : > { %550 = vmatmul.mubr.msk.f32.gmra.mxu0 %vm199_vm0, %v177_v14  ;;  %562 = vmatmul.mubr.msk.f32.gmra.mxu1 %vm199_vm0, %v185_v15 }
  0x26   : > { %552 = vmatprep.mubr.msk.f32.mxu0 %vm199_vm0, %v178_v16  ;;  %564 = vmatprep.mubr.msk.f32.mxu1 %vm199_vm0, %v186_v17 }
  0x29   : > { %553 = vmatmul.mubr.msk.f32.gmra.mxu0 %vm199_vm0, %v179_v18  ;;  %565 = vmatmul.mubr.msk.f32.gmra.mxu1 %vm199_vm0, %v187_v19 }
  0xdd   : > { %v545_v21 = vpop.f32.mrf.mxu0  ;;  %v557_v22 = vpop.f32.mrf.mxu1 }
  0xde   : > { %v320_v23 = vadd.f32 %v545_v21, %v492_v20  ;;  %v360_v24 = vadd.f32 %v557_v22, %v492_v20 }
  0xdf   : > { %v314_v25 = vpop.f32.mrf.mxu0  ;;  %v354_v26 = vpop.f32.mrf.mxu1 }
  0xe0   : > { %394 = vst [vmem:[%s805_s20 + $0x8] sm:$0xff] %v320_v23  ;;  %402 = vst [vmem:[%s805_s20 + $0x48] sm:$0xff] %v360_v24  ;;  %v315_v27 = vadd.f32 %v492_v20, %v314_v25  ;;  %v355_v28 = vadd.f32 %v492_v20, %v354_v26 }
  0xe1   : > { %v548_v29 = vpop.f32.mrf.mxu0  ;;  %v560_v30 = vpop.f32.mrf.mxu1 }
  0xe2   : > { %393 = vst [vmem:[%s805_s20] sm:$0xff] %v315_v27  ;;  %401 = vst [vmem:[%s805_s20 + $0x40] sm:$0xff] %v355_v28  ;;  %v330_v31 = vadd.f32 %v548_v29, %v492_v20  ;;  %v370_v32 = vadd.f32 %v560_v30, %v492_v20 }
  0xe3   : > { %v324_v33 = vpop.f32.mrf.mxu0  ;;  %v364_v34 = vpop.f32.mrf.mxu1 }
  0xe4   : > { %396 = vst [vmem:[%s805_s20 + $0x18] sm:$0xff] %v330_v31  ;;  %404 = vst [vmem:[%s805_s20 + $0x58] sm:$0xff] %v370_v32  ;;  %v325_v35 = vadd.f32 %v492_v20, %v324_v33  ;;  %v365_v36 = vadd.f32 %v492_v20, %v364_v34 }
  0xe5   : > { %v551_v37 = vpop.f32.mrf.mxu0  ;;  %v563_v38 = vpop.f32.mrf.mxu1 }
  0xe6   : > { %395 = vst [vmem:[%s805_s20 + $0x10] sm:$0xff] %v325_v35  ;;  %403 = vst [vmem:[%s805_s20 + $0x50] sm:$0xff] %v365_v36  ;;  %v340_v39 = vadd.f32 %v551_v37, %v492_v20  ;;  %v380_v40 = vadd.f32 %v563_v38, %v492_v20 }
  0xe7   : > { %v334_v41 = vpop.f32.mrf.mxu0  ;;  %v374_v42 = vpop.f32.mrf.mxu1 }
  0xe8   : > { %398 = vst [vmem:[%s805_s20 + $0x28] sm:$0xff] %v340_v39  ;;  %406 = vst [vmem:[%s805_s20 + $0x68] sm:$0xff] %v380_v40  ;;  %v335_v43 = vadd.f32 %v492_v20, %v334_v41  ;;  %v375_v44 = vadd.f32 %v492_v20, %v374_v42 }
  0xe9   : > { %v554_v45 = vpop.f32.mrf.mxu0  ;;  %v566_v46 = vpop.f32.mrf.mxu1 }
  0xea   : > { %397 = vst [vmem:[%s805_s20 + $0x20] sm:$0xff] %v335_v43  ;;  %405 = vst [vmem:[%s805_s20 + $0x60] sm:$0xff] %v375_v44  ;;  %v350_v47 = vadd.f32 %v554_v45, %v492_v20  ;;  %v390_v48 = vadd.f32 %v566_v46, %v492_v20 }
  0xeb   : > { %v344_v49 = vpop.f32.mrf.mxu0  ;;  %v384_v50 = vpop.f32.mrf.mxu1 }
  0xec   : > { %400 = vst [vmem:[%s805_s20 + $0x38] sm:$0xff] %v350_v47  ;;  %408 = vst [vmem:[%s805_s20 + $0x78] sm:$0xff] %v390_v48  ;;  %v345_v51 = vadd.f32 %v492_v20, %v344_v49  ;;  %v385_v52 = vadd.f32 %v492_v20, %v384_v50 }
  0xee   : > { %399 = vst [vmem:[%s805_s20 + $0x30] sm:$0xff] %v345_v51  ;;  %407 = vst [vmem:[%s805_s20 + $0x70] sm:$0xff] %v385_v52 }
  0xef   : > { %629 = shalt.err (!%p626_p3)
}
  0xf0   : > { %s630_s6 = scalar_lea.hbm %s824_s28, 2048  ;;  %s634_s9 = scalar_lea.hbm %s877_s3, 4096 }
  0xf1   : > { %p631_p4 = scmp.ne.s32.totalorder %s824_s28, %s630_s6  ;;  %p635_p9 = scmp.lt.s32.totalorder %s824_s28, %s877_s3 }
  0xf2   : > { %p636_p10 = scmp.lt.s32.totalorder %s634_s9, %s630_s6 }
  0xf3   : > { %p632_p7 = pnand %p631_p4, %p739_p5 }
  0xf4   : > { %p637_p11 = por %p636_p10, %p635_p9 }
  0xf5   : > { %p633_p8 = pneg %p632_p7 }
  0xf7   : > { %p638_p12 = pnand %p637_p11, %p633_p8 }
  0xf9   : > { %641 = shalt.err (!%p638_p12)
}
  0xfa   : > { %s679_s17 = smov 128   ;;  %s680_s19 = smov 8  }
  0xfb   : > { %575 = dma.vmem_to_hbm [thread:$0]  (%p739_p5), %s826_s25, 2048, %s824_s28, %s834_s16, %s679_s17, %s679_s17, %s680_s19  }
  0xfc PF: > { %p581_p13 = scmp.ge.s32.totalorder %s676_s15, 2  ;;  %s438_s20 = sand.u32 1, %s664_s12  }
  0xfd   : > { %s439_s24 = scalar_lea.sflag [#allocation3], %s438_s20 }
  0xfe   : > { %p578_p0 = pnand %p581_p13, %p743_p6 }
 0x100   : > { %p579_p1 = pneg %p578_p0 }
 0x102   : > { %659 = dma.done.wait (%p579_p1), %s439_s24, 2048  }
 0x103   : > { %661 = vsyncadd (%p579_p1), %s439_s24, 4294965248  ;;  %p13_p2 = scmp.ge.s32.totalorder %s726_s18, 4   ;;  %s880_s12 = smov %s668_s13 }
 0x104   : > { %s881_s13 = smov %s672_s14  ;;  %s882_s14 = smov %s737_s21 }
 0x105   : > { %s883_s15 = smov %s726_s18  ;;  %15 = sbr.rel (!%p13_p2) target bundleno = 3 (0x3), region = 67 }
 0x10a   :  { %444 = vsyncpa [#allocation3], 1 }
 0x10b   :  { %446 = vsyncpa [#allocation3 + $0x1], 1 }

</bundles_post_ra>
